<compile_context>
chip_gen: v5e
topology: v5e:2x2
jax: 0.10.0
libtpu: 0.0.40
codegen_flags: <defaults>
</compile_context>

<pallas_src>
import functools
import math

import jax
import jax.numpy as jnp
from jax import lax
from jax.experimental import pallas as pl
from jax.experimental.pallas import tpu as pltpu


# ---------------------------------------------------------------------------
# Buffer construction (deterministic, mirrors torch __init__)
# ---------------------------------------------------------------------------
def make_positional_encoding(d_model, max_len=50, dtype=jnp.float32):
    position = jnp.arange(max_len, dtype=jnp.float32)[:, None]              # (L, 1)
    div_term = jnp.exp(jnp.arange(0, d_model, 2, dtype=jnp.float32)
                       * (-math.log(10000.0) / d_model))                    # (D/2,)
    pe = jnp.zeros((max_len, d_model), dtype=jnp.float32)
    pe = pe.at[:, 0::2].set(jnp.sin(position * div_term))
    pe = pe.at[:, 1::2].set(jnp.cos(position * div_term))
    # torch: pe.unsqueeze(0).transpose(0, 1) -> (max_len, 1, d_model)
    return pe[:, None, :].astype(dtype)


# ---------------------------------------------------------------------------
# Kernels (operate on the flattened 2-D (S, B*D) view)
# ---------------------------------------------------------------------------
def _pe_rows(pe_ref, ts):
    # pe_ref holds the whole (padded) pe slab resident in VMEM; grab the rows
    # for this sequence tile.  When the grid has a single step the block IS
    # the tile, so read it directly (no dynamic slice needed).
    if pe_ref.shape[0] == ts:
        return pe_ref[...]
    s0 = pl.multiple_of(pl.program_id(0) * ts, ts)
    return pe_ref[pl.ds(s0, ts), :]


def _pe_add_eval_kernel(x_ref, pe_ref, o_ref, *, ts, reps):
    pe_rows = _pe_rows(pe_ref, ts)                        # (ts, D)
    pe_tile = jnp.tile(pe_rows, (1, reps)) if reps > 1 else pe_rows  # (ts, B*D)
    o_ref[...] = (x_ref[...] + pe_tile).astype(o_ref.dtype)


def _pe_add_train_kernel(x_ref, pe_ref, bits_ref, o_ref, *,
                         ts, reps, threshold, inv_keep):
    # Inverted dropout.  bits are uniform int32; P(bits >= threshold) == 1 - p.
    pe_rows = _pe_rows(pe_ref, ts)
    pe_tile = jnp.tile(pe_rows, (1, reps)) if reps > 1 else pe_rows
    y = x_ref[...] + pe_tile                              # stays in x.dtype
    keep = bits_ref[...] >= jnp.int32(threshold)
    o_ref[...] = jnp.where(keep, y * inv_keep, jnp.zeros_like(y)).astype(o_ref.dtype)


# ---------------------------------------------------------------------------
# Chip hints / tiling heuristics
# ---------------------------------------------------------------------------
def _chip_hints():
    """Best-effort (num_tensorcores, per-step tile-byte target).

    Falls back to conservative single-core defaults when the hardware query is
    unavailable (e.g. CPU interpret mode or older jax)."""
    cores = 1
    try:
        info = pltpu.get_tpu_info()
        for name in ("num_cores", "num_tensorcores", "tensorcore_count",
                     "cores_per_chip"):
            v = getattr(info, name, None)
            if v:
                cores = int(v)
                break
    except Exception:
        pass
    # Multi-TC chips (v7x) have 3.2 TB/s HBM: bigger tiles amortize the
    # ~0.35 us per-step fixed cost.  v5e/v6e are already ~85% of roofline at 2 MiB.
    target = (4 << 20) if cores >= 2 else (2 << 20)
    return cores, target


def _choose_seq_tile(S, row_bytes, n_cores, target_tile_bytes):
    """Largest legal seq-tile (multiple of 8 sublanes unless it spans all of S)
    within the tile-byte budget.  Only force a multi-step grid when the chip
    actually has >=2 TensorCores to feed."""
    ts = max(1, min(S, target_tile_bytes // max(1, row_bytes)))
    if ts >= S:
        if n_cores >= 2 and S >= 16:
            ts = ((-(-S // n_cores)) + 7) // 8 * 8        # cdiv, rounded up to 8
        else:
            return S
    if ts < S:
        ts = max(8, (ts // 8) * 8)
    return int(min(ts, S))


# ---------------------------------------------------------------------------
# Wrapper
# ---------------------------------------------------------------------------
def positional_encoding(x, pe, *, p=0.1, train=False, seed=0, donate_x=False):
    """Forward of PositionalEncoding: dropout(x + pe[:S]).

    x: (S, B, D); pe: (max_len, 1, D) with max_len >= S.
    Dropout mask is deterministic given `seed` but does not bit-match torch's
    RNG stream.
    """
    S, B, D = x.shape
    if pe.ndim != 3 or pe.shape[0] < S or pe.shape[1] != 1 or pe.shape[2] != D:
        raise ValueError(f"pe shape {pe.shape} incompatible with x shape {x.shape}")
    if p < 0.0 or p > 1.0:
        raise ValueError(f"dropout p must be in [0, 1], got {p}")

    dtype = x.dtype
    itemsize = jnp.dtype(dtype).itemsize
    N = B * D

    is_train = bool(train) and p > 0.0
    if is_train and p >= 1.0:
        # torch.nn.Dropout(p=1.0) zeroes everything in training mode.
        return jnp.zeros_like(x)

    # Lane-dense 2-D view: rows are sequence positions, lanes are (batch, d).
    x2 = x.reshape(S, N)

    n_cores, target_tile_bytes = _chip_hints()
    ts = _choose_seq_tile(S, N * itemsize, n_cores, target_tile_bytes)
    grid_s = pl.cdiv(S, ts)
    s_pad = grid_s * ts

    # pe slab: (S_pad, D) in x.dtype, VMEM-resident for the whole grid.
    pe2 = pe[:S, 0, :].astype(dtype)
    if s_pad > S:
        pe2 = jnp.pad(pe2, ((0, s_pad - S), (0, 0)))      # padded rows are masked out

    x_spec = pl.BlockSpec((ts, N), lambda s: (s, 0))
    pe_spec = pl.BlockSpec((s_pad, D), lambda s: (0, 0))   # constant -> fetched once
    out_spec = pl.BlockSpec((ts, N), lambda s: (s, 0))
    out_shape = jax.ShapeDtypeStruct((S, N), dtype)

    # Explicit scoped-VMEM budget: double-buffered x/out (+int32 bits in train)
    # plus the resident pe slab, with headroom.
    est = 2 * 2 * ts * N * itemsize + 2 * s_pad * D * itemsize
    if is_train:
        est += 2 * ts * N * 4
    vmem_limit = int(min(48 << 20, max(32 << 20, est + (8 << 20))))
    # TODO(synk): add a second (lane) grid axis for extreme B*d_model where even
    # an 8-row tile overflows VMEM; irrelevant for this module's max_len=50 regime.
    cparams = pltpu.CompilerParams(dimension_semantics=("parallel",),
                                   vmem_limit_bytes=vmem_limit)

    if not is_train:
        out2 = pl.pallas_call(
            functools.partial(_pe_add_eval_kernel, ts=ts, reps=B),
            out_shape=out_shape,
            grid=(grid_s,),
            in_specs=[x_spec, pe_spec],
            out_specs=out_spec,
            input_output_aliases=({0: 0} if donate_x else {}),
            compiler_params=cparams,
        )(x2, pe2)
        return out2.reshape(S, B, D)

    # Training: random bits generated once on the host side of the kernel
    # (jax.random), streamed in as int32.  This avoids the in-kernel TPU
    # hardware PRNG, which has no lowering under interpret/CPU execution.
    rbits = jax.random.bits(jax.random.PRNGKey(seed), (S, N), dtype=jnp.uint32)
    bits = lax.bitcast_convert_type(rbits, jnp.int32)
    bits_spec = pl.BlockSpec((ts, N), lambda s: (s, 0))

    # Over all 2^32 bit patterns interpreted as int32, P(bits >= t) == 1 - p.
    t = int(round(p * (1 << 32))) - (1 << 31)
    t = max(-(1 << 31), min(t, (1 << 31) - 1))
    inv_keep = 1.0 / (1.0 - p)

    out2 = pl.pallas_call(
        functools.partial(_pe_add_train_kernel, ts=ts, reps=B,
                          threshold=t, inv_keep=inv_keep),
        out_shape=out_shape,
        grid=(grid_s,),
        in_specs=[x_spec, pe_spec, bits_spec],
        out_specs=out_spec,
        input_output_aliases=({0: 0} if donate_x else {}),
        compiler_params=cparams,
    )(x2, pe2, bits)
    return out2.reshape(S, B, D)


# ---------------------------------------------------------------------------
# Demo / self-test
# ---------------------------------------------------------------------------
if __name__ == "__main__":
    S, B, D = 8, 2, 32          # seq=8, batch=2, d_model=32
    max_len = 50

    key = jax.random.PRNGKey(0)
    x = jax.random.normal(key, (S, B, D), dtype=jnp.float32)
    pe = make_positional_encoding(D, max_len=max_len)

    # --- eval mode (dropout == identity) -------------------------------------
    out = jax.block_until_ready(positional_encoding(x, pe, p=0.1, train=False))
    ref = x + pe[:S]
    assert out.shape == (S, B, D)
    assert jnp.allclose(out, ref, atol=1e-6, rtol=1e-6)

    # --- train mode (inverted dropout, p=0.1) ---------------------------------
    p = 0.1
    out_tr = jax.block_until_ready(
        positional_encoding(x, pe, p=p, train=True, seed=42))
    assert out_tr.shape == (S, B, D)
    scaled = ref / (1.0 - p)
    is_kept = jnp.isclose(out_tr, scaled, atol=1e-5, rtol=1e-5)
    is_dropped = out_tr == 0.0
    # Every element is either exactly dropped or kept-and-rescaled.
    assert bool(jnp.all(is_kept | is_dropped))
    # Loose statistical sanity check for p = 0.1 over 512 elements.
    drop_frac = float(jnp.mean(is_dropped.astype(jnp.float32)))
    assert 0.0 <= drop_frac < 0.5

    print("KERNEL_OK")
</pallas_src>

<mosaic_0001>
module attributes {stable_mosaic.version = 11 : i64} {
  func.func @_pe_add_eval_kernel(%arg0: i32, %arg1: memref<8x64xf32, #tpu.memory_space<vmem>>, %arg2: memref<8x32xf32, #tpu.memory_space<vmem>>, %arg3: memref<8x64xf32, #tpu.memory_space<vmem>>) attributes {dimension_semantics = [#tpu.dimension_semantics<parallel>], iteration_bounds = array<i64: 1>, scalar_prefetch = 0 : i64, scratch_operands = 0 : i64, tpu.core_type = #tpu.core_type<tc>, window_params = [{transform_indices = @transform_0, window_bounds = array<i64: 8, 64>}, {pipeline_mode = #tpu.pipeline_mode<synchronous>, transform_indices = @transform_1, window_bounds = array<i64: 8, 32>}, {transform_indices = @transform_2, window_bounds = array<i64: 8, 64>}]} {
    %c0 = arith.constant 0 : index
    %c0_0 = arith.constant 0 : index
    %0 = vector.load %arg2[%c0, %c0_0] : memref<8x32xf32, #tpu.memory_space<vmem>>, vector<8x32xf32>
    %1 = tpu.concatenate %0, %0 in 1 : vector<8x32xf32>, vector<8x32xf32> -> vector<8x64xf32>
    %c0_1 = arith.constant 0 : index
    %c0_2 = arith.constant 0 : index
    %2 = vector.load %arg1[%c0_1, %c0_2] : memref<8x64xf32, #tpu.memory_space<vmem>>, vector<8x64xf32>
    %3 = arith.addf %2, %1 : vector<8x64xf32>
    %c0_3 = arith.constant 0 : index
    %c0_4 = arith.constant 0 : index
    %4 = vector.load %arg3[%c0_3, %c0_4] : memref<8x64xf32, #tpu.memory_space<vmem>>, vector<8x64xf32>
    tpu.vector_store %arg3[%c0_3, %c0_4], %3 {strides = array<i32>} : memref<8x64xf32, #tpu.memory_space<vmem>>, vector<8x64xf32>,
    return
  }
  func.func @transform_0(%arg0: i32) -> (i32, i32) {
    %c0_i32 = arith.constant 0 : i32
    %c0_i32_0 = arith.constant 0 : i32
    return %arg0, %c0_i32 : i32, i32
  }
  func.func @transform_1(%arg0: i32) -> (i32, i32) {
    %c0_i32 = arith.constant 0 : i32
    %c0_i32_0 = arith.constant 0 : i32
    %c0_i32_1 = arith.constant 0 : i32
    return %c0_i32, %c0_i32_0 : i32, i32
  }
  func.func @transform_2(%arg0: i32) -> (i32, i32) {
    %c0_i32 = arith.constant 0 : i32
    %c0_i32_0 = arith.constant 0 : i32
    return %arg0, %c0_i32 : i32, i32
  }
}

</mosaic_0001>

<bundles_post_ra>
// kernel: tpu_custom_call.1
= control target key start
LH: loop header
LB: loop body
LE: loop exit
PB: predicated region body
PF: predicated region fallthrough
CT: control target
= control target key end

     0   :  { %7 = vsyncpa [#allocation3], 0  ;;  %s179_s0 = inlined_call_operand.hbm [shape: f32[8,64], index: 0, kind: input, shape index: {}]   ;;  %s180_s1 = inlined_call_operand.hbm [shape: f32[8,32], index: 1, kind: input, shape index: {}]   ;;  %s181_s2 = inlined_call_operand.hbm [shape: f32[8,64], index: 2, kind: output, shape index: {}]  }
   0x1   :  { %8 = vsyncpa [#allocation6], 0 }
   0x2   :  { %9 = vsyncpa [#allocation4], 0  ;;  %s15_s11 = sshll.u32 %s179_s0, 4  ;;  %s151_s12 = smov [#allocation2]   ;;  %s16_s11 = int_to_ptr.hbm [resolvable:$true] %s15_s11 }
   0x3   :  { %s17_s13 = sshll.u32 %s151_s12, 4  ;;  %s26_s16 = sshll.u32 %s180_s1, 4  ;;  %s18_s13 = int_to_ptr.vmem [resolvable:$true] %s17_s13  ;;  %s27_s16 = int_to_ptr.hbm [resolvable:$true] %s26_s16 }
   0x4   :  { %20 = dma.hbm_to_vmem [thread:$0]  %s16_s11, 128, %s18_s13, [#allocation3]  }
   0x5   :  { %s152_s17 = smov [#allocation5]  }
   0x6   :  { %s28_s18 = sshll.u32 %s152_s17, 4  ;;  %s29_s18 = int_to_ptr.vmem [resolvable:$true] %s28_s18 }
   0x7   :  { %31 = dma.hbm_to_vmem [thread:$0]  %s27_s16, 128, %s29_s18, [#allocation6]  }
   0x8   :  { %145 = dma.done.wait [#allocation3], 128  }
   0x9   :  { %146 = vsyncadd [#allocation3], 4294967168 }
   0xa   :  { %147 = dma.done.wait [#allocation6], 128  }
   0xb   :  { %148 = vsyncadd [#allocation6], 4294967168  ;;  %v40_v0 = vld [vmem:[#allocation5] sm:$0xff]  ;;  %s153_s0 = smov 32   ;;  %vm45_vm0 = vcmask 261120   ;;  %v47_v1 = vld [vmem:[#allocation2] sm:$0xff] }
   0xc   :  { %42 = vrot.lane.b32.xlu0 %v40_v0, %s153_s0  ;;  %s154_s19 = smov [#allocation7]   ;;  %s58_s1 = sshll.u32 %s181_s2, 4  ;;  %vm49_vm1 = vcmask 523264   ;;  %s59_s1 = int_to_ptr.hbm [resolvable:$true] %s58_s1 }
   0xd   :  { %s56_s20 = sshll.u32 %s154_s19, 4  ;;  %s57_s20 = int_to_ptr.vmem [resolvable:$true] %s56_s20 }
  0x7e   :  { %v43_v2 = vpop.permute.xlu0 %42 }
  0x7f   :  { %v46_v3 = vsel %vm45_vm0, %v40_v0, %v43_v2 }
  0x80   :  { %v48_v4 = vadd.f32 %v47_v1, %v46_v3 }
  0x82   :  { %50 = vst.msk [vmem:[#allocation7] sm:$0xff] %vm49_vm1, %v48_v4 }
  0x83   :  { %61 = dma.vmem_to_hbm [thread:$0]  %s57_s20, 128, %s59_s1, [#allocation4]  }
  0x84   :  { %149 = dma.done.wait [#allocation4], 128  }
  0x85   :  { %150 = vsyncadd [#allocation4], 4294967168 }
  0x86   :  { %66 = vsyncpa [#allocation3], 1 }
  0x87   :  { %67 = vsyncpa [#allocation6], 1 }
  0x88   :  { %68 = vsyncpa [#allocation4], 1 }

</bundles_post_ra>
